<compile_context>
chip_gen: v5e
topology: v5e:2x2
jax: 0.10.0
libtpu: 0.0.40
codegen_flags: <defaults>
</compile_context>

<pallas_src>
import numpy as np
import jax
import jax.numpy as jnp
from jax.experimental import pallas as pl
from jax.experimental.pallas import tpu as pltpu

K = 7                 # DoubleConv kernel_size
PAD = (K - 1) // 2    # = 3
EPS = 1e-5            # BatchNorm eps


def _round_up(x, m):
    return ((x + m - 1) // m) * m


def _interp_coeffs(l1, l2):
    """2-tap linear upsample (align_corners=True): out[i] = (1-f)*x[lo] + f*x[hi]."""
    idx = np.arange(l2)
    src = idx * (l1 - 1) / (l2 - 1) if l2 > 1 else np.zeros(l2)
    lo = np.floor(src).astype(np.int32)
    hi = np.minimum(lo + 1, l1 - 1).astype(np.int32)
    frac = (src - lo).astype(np.float32)
    return lo, hi, frac


def _tap_masks(b_blk, l2):
    """mask[t, p] = 1 iff 0 <= (p % l2) + t - PAD < l2 (conv zero-padding + no
    cross-batch bleed when batch elements are concatenated along lanes)."""
    pos = np.arange(b_blk * l2) % l2
    m = np.zeros((K, b_blk * l2), np.float32)
    for t in range(K):
        src = pos + t - PAD
        m[t] = ((src >= 0) & (src < l2)).astype(np.float32)
    return m


def _pick_batch_block(n, l2, max_lanes=4096, min_lanes=1024):
    """Batch elements per grid step: lane-aligned blocks, prefer >=2 grid steps
    (v7x megacore) while keeping per-step lanes large enough to amortize the
    ~0.35us per-step overhead."""
    cands = [b for b in range(1, n + 1)
             if n % b == 0 and (b * l2) % 128 == 0 and b * l2 <= max_lanes]
    multi = [b for b in cands if n // b >= 2 and b * l2 >= min_lanes]
    if multi:
        return max(multi)
    if cands:
        return max(cands)
    return n          # fallback: whole batch in one step (block == full array, always legal)


def up_doubleconv_kernel(x2_ref, xlo_ref, xhi_ref, upw_ref, mask_ref,
                         w1_ref, s1_ref, b1_ref, w2_ref, s2_ref, b2_ref,
                         out_ref):
    f32 = jnp.float32
    bf16 = jnp.bfloat16
    c2, bl2 = x2_ref.shape
    c1 = xlo_ref.shape[0]
    cin = c1 + c2
    cmid = s1_ref.shape[0]
    cout = s2_ref.shape[0]
    cp1 = w1_ref.shape[1] // K        # sublane-aligned per-tap channel stride
    cp2 = w2_ref.shape[1] // K

    masks = mask_ref[...]                                        # (K, B*L2) f32

    # --- nn.Upsample(scale_factor=2, mode='linear', align_corners=True) -------
    # 2-tap lerp with per-lane constant weights (lo/hi neighbours pre-gathered).
    x1u = (xlo_ref[...].astype(f32) * upw_ref[0:1, :]
           + xhi_ref[...].astype(f32) * upw_ref[1:2, :])         # (C1, B*L2) f32

    # --- torch.cat([x2, x1_up], dim=1) -----------------------------------------
    x_cat = jnp.concatenate([x2_ref[...].astype(f32), x1u], axis=0)  # (Cin, B*L2)

    def im2col(x, c, cp):
        """Stack K rolled+masked copies of x into a (K*cp, B*L2) bf16 MXU RHS."""
        zpad = jnp.zeros((cp - c, bl2), f32) if cp > c else None
        pieces = []
        for t in range(K):
            shift = (PAD - t) % bl2
            p = pltpu.roll(x, shift, axis=1) if shift else x     # piece[p] = x[p + t - PAD]
            if t != PAD:                     # centre tap is always in-bounds
                p = p * masks[t:t + 1, :]    # zero padded / cross-batch positions
            pieces.append(p)
            if zpad is not None:
                pieces.append(zpad)          # keep per-tap stride sublane aligned
        return jnp.concatenate(pieces, axis=0).astype(bf16)

    # --- Conv1d #1 (k=7, pad=3, bias=False): one im2col matmul, then BN + ReLU --
    y1 = jnp.dot(w1_ref[...], im2col(x_cat, cin, cp1),
                 preferred_element_type=f32)                     # (Cmid, B*L2)
    h = jnp.maximum(y1 * s1_ref[...] + b1_ref[...], 0.0)

    # --- Conv1d #2 + BN + ReLU --------------------------------------------------
    y2 = jnp.dot(w2_ref[...], im2col(h, cmid, cp2),
                 preferred_element_type=f32)                     # (Cout, B*L2)
    out_ref[...] = jnp.maximum(y2 * s2_ref[...] + b2_ref[...], 0.0).astype(out_ref.dtype)


def up_forward_pallas(x1, x2, w1, bn1_scale, bn1_bias, w2, bn2_scale, bn2_bias):
    n, c1, l1 = x1.shape
    n2, c2, l2 = x2.shape
    assert n2 == n and l2 == 2 * l1, "x2 length must equal factor * x1 length"
    cmid, cin_w, kk = w1.shape
    cout = w2.shape[0]
    cin = c1 + c2
    assert cin_w == cin and kk == K and w2.shape == (cout, cmid, K)

    bf16 = jnp.bfloat16
    b_blk = _pick_batch_block(n, l2)
    grid_steps = n // b_blk
    bl2 = b_blk * l2

    # 2-tap upsample: gather lo/hi neighbours (constant indices) while converting
    # NCW -> (C, N*L2) lane-major layout; the lerp itself runs inside the kernel.
    lo, hi, frac = _interp_coeffs(l1, l2)
    xlo = jnp.transpose(x1[:, :, lo], (1, 0, 2)).reshape(c1, n * l2).astype(bf16)
    xhi = jnp.transpose(x1[:, :, hi], (1, 0, 2)).reshape(c1, n * l2).astype(bf16)
    x2_2d = jnp.transpose(x2, (1, 0, 2)).reshape(c2, n * l2).astype(bf16)

    upw = jnp.asarray(np.tile(np.stack([1.0 - frac, frac]).astype(np.float32),
                              (1, b_blk)))                       # (2, B*L2) f32
    masks = jnp.asarray(_tap_masks(b_blk, l2))                   # (K, B*L2) f32

    # im2col conv weights: (Cout_c, Cin_c, K) -> (Cout_c, K*cp), per-tap stride
    # padded to a multiple of 8 rows (zero columns are free on the MXU).
    cp1 = _round_up(cin, 8)
    cp2 = _round_up(cmid, 8)
    w1_kc = jnp.transpose(w1, (0, 2, 1))                         # (Cmid, K, Cin)
    w1s = jnp.pad(w1_kc, ((0, 0), (0, 0), (0, cp1 - cin))
                  ).reshape(cmid, K * cp1).astype(bf16)
    w2_kc = jnp.transpose(w2, (0, 2, 1))                         # (Cout, K, Cmid)
    w2s = jnp.pad(w2_kc, ((0, 0), (0, 0), (0, cp2 - cmid))
                  ).reshape(cout, K * cp2).astype(bf16)

    s1 = bn1_scale.reshape(cmid, 1).astype(jnp.float32)
    b1 = bn1_bias.reshape(cmid, 1).astype(jnp.float32)
    s2 = bn2_scale.reshape(cout, 1).astype(jnp.float32)
    b2 = bn2_bias.reshape(cout, 1).astype(jnp.float32)

    grid_spec = pltpu.PrefetchScalarGridSpec(
        num_scalar_prefetch=0,
        grid=(grid_steps,),
        in_specs=[
            pl.BlockSpec((c2, bl2), lambda i: (0, i)),           # x2           (C2, B*L2)
            pl.BlockSpec((c1, bl2), lambda i: (0, i)),           # x1 lo gather (C1, B*L2)
            pl.BlockSpec((c1, bl2), lambda i: (0, i)),           # x1 hi gather (C1, B*L2)
            pl.BlockSpec((2, bl2), lambda i: (0, 0)),            # lerp weights
            pl.BlockSpec((K, bl2), lambda i: (0, 0)),            # tap validity masks
            pl.BlockSpec((cmid, K * cp1), lambda i: (0, 0)),     # conv1 im2col W
            pl.BlockSpec((cmid, 1), lambda i: (0, 0)),           # bn1 scale
            pl.BlockSpec((cmid, 1), lambda i: (0, 0)),           # bn1 bias
            pl.BlockSpec((cout, K * cp2), lambda i: (0, 0)),     # conv2 im2col W
            pl.BlockSpec((cout, 1), lambda i: (0, 0)),           # bn2 scale
            pl.BlockSpec((cout, 1), lambda i: (0, 0)),           # bn2 bias
        ],
        out_specs=pl.BlockSpec((cout, bl2), lambda i: (0, i)),
    )

    # VMEM budget from actual block / intermediate sizes (4x margin, 8 MiB floor).
    block_bytes = (2 * 2 * bl2 * (c2 + 2 * c1)                   # bf16 inputs, double-buffered
                   + 4 * bl2 * (2 + K)                           # lerp weights + masks
                   + 2 * (cmid * K * cp1 + cout * K * cp2)       # stacked conv weights
                   + 4 * 2 * (cmid + cout)                       # BN scale/bias
                   + 2 * 4 * cout * bl2)                         # f32 output, double-buffered
    interm_bytes = (4 * bl2 * (cin + 2 * cmid + cout)            # x_cat, y1/h, y2
                    + (4 + 2) * bl2 * K * (cp1 + cp2))           # im2col pieces + bf16 RHS
    vmem_limit = int(min(32 * 1024 * 1024,
                         max(8 * 1024 * 1024, 4 * (block_bytes + interm_bytes))))

    flops = n * l2 * (3 * c1 + 2 * cmid * K * cp1 + 2 * cout * K * cp2
                      + 4 * (cmid + cout) + (K - 1) * (cin + cmid))
    bytes_accessed = (2 * n * l2 * (c2 + 2 * c1) + 4 * bl2 * (2 + K)
                      + 2 * (cmid * K * cp1 + cout * K * cp2) + 4 * n * l2 * cout)

    out2d = pl.pallas_call(
        up_doubleconv_kernel,
        out_shape=jax.ShapeDtypeStruct((cout, n * l2), jnp.float32),
        grid_spec=grid_spec,
        compiler_params=pltpu.CompilerParams(
            dimension_semantics=("parallel",),        # batch axis -> megacore on v7x
            vmem_limit_bytes=vmem_limit),
        cost_estimate=pl.CostEstimate(
            flops=flops, transcendentals=0, bytes_accessed=bytes_accessed),
    )(x2_2d, xlo, xhi, upw, masks, w1s, s1, b1, w2s, s2, b2)

    # (Cout, N*L2) -> (N, Cout, L2)
    return jnp.transpose(out2d.reshape(cout, n, l2), (1, 0, 2))


def up_forward_reference(x1, x2, w1, s1, b1, w2, s2, b2):
    """Pure-JAX reference (Upsample-linear align_corners + cat + 2x(conv->BN->ReLU))."""
    n, c1, l1 = x1.shape
    l2 = 2 * l1
    lo, hi, frac = _interp_coeffs(l1, l2)
    x1u = x1[:, :, lo] * (1.0 - frac) + x1[:, :, hi] * frac
    x = jnp.concatenate([x2, x1u], axis=1)

    def conv_bn_relu(xx, w, s, b):
        y = jax.lax.conv_general_dilated(
            xx, w, window_strides=(1,), padding=[(PAD, PAD)],
            dimension_numbers=("NCH", "OIH", "NCH"),
            precision=jax.lax.Precision.HIGHEST)
        y = y * s[None, :, None] + b[None, :, None]
        return jnp.maximum(y, 0.0)

    return conv_bn_relu(conv_bn_relu(x, w1, s1, b1), w2, s2, b2)


if __name__ == "__main__":
    # Shapes consistent with Up(in_channels=8, out_channels=4, linear=True, factor=2):
    # x1: (N, 4, 8) upsampled to length 16, x2: (N, 4, 16); cat -> 8 channels.
    N, C1, L1 = 2, 4, 8
    C2 = 4
    CIN = C1 + C2          # in_channels = 8
    COUT = 4               # out_channels
    CMID = CIN // 2        # mid_channels (linear branch of Up)
    L2 = 2 * L1

    key = jax.random.PRNGKey(0)
    k1, k2, k3, k4 = jax.random.split(key, 4)
    x1 = jax.random.normal(k1, (N, C1, L1), jnp.float32)
    x2 = jax.random.normal(k2, (N, C2, L2), jnp.float32)
    # Conv weights, PyTorch layout (Cout, Cin, K), bias=False.
    w1 = 0.2 * jax.random.normal(k3, (CMID, CIN, K), jnp.float32)
    w2 = 0.2 * jax.random.normal(k4, (COUT, CMID, K), jnp.float32)

    # Deterministic BatchNorm1d parameters + running stats (eval mode), folded.
    gamma1 = 1.0 + 0.10 * jnp.arange(CMID, dtype=jnp.float32)
    beta1 = 0.05 * jnp.arange(CMID, dtype=jnp.float32)
    rmean1 = 0.02 * jnp.arange(CMID, dtype=jnp.float32)
    rvar1 = 1.0 + 0.03 * jnp.arange(CMID, dtype=jnp.float32)
    gamma2 = 1.0 + 0.07 * jnp.arange(COUT, dtype=jnp.float32)
    beta2 = -0.04 * jnp.arange(COUT, dtype=jnp.float32)
    rmean2 = 0.01 * jnp.arange(COUT, dtype=jnp.float32)
    rvar2 = 1.0 + 0.05 * jnp.arange(COUT, dtype=jnp.float32)

    s1 = gamma1 / jnp.sqrt(rvar1 + EPS)
    b1 = beta1 - rmean1 * s1
    s2 = gamma2 / jnp.sqrt(rvar2 + EPS)
    b2 = beta2 - rmean2 * s2

    out = up_forward_pallas(x1, x2, w1, s1, b1, w2, s2, b2)
    out = jax.block_until_ready(out)

    ref = jax.block_until_ready(up_forward_reference(x1, x2, w1, s1, b1, w2, s2, b2))
    # bf16 matmul inputs (f32 accumulation): slightly looser tolerance than pure f32.
    np.testing.assert_allclose(np.asarray(out), np.asarray(ref), rtol=3e-2, atol=3e-2)
    print("KERNEL_OK")
</pallas_src>

<mosaic_0001>
module attributes {stable_mosaic.version = 11 : i64} {
  func.func @up_doubleconv_kernel(%arg0: i32, %arg1: memref<4x32xbf16, #tpu.memory_space<vmem>>, %arg2: memref<4x32xbf16, #tpu.memory_space<vmem>>, %arg3: memref<4x32xbf16, #tpu.memory_space<vmem>>, %arg4: memref<2x32xf32, #tpu.memory_space<vmem>>, %arg5: memref<7x32xf32, #tpu.memory_space<vmem>>, %arg6: memref<4x56xbf16, #tpu.memory_space<vmem>>, %arg7: memref<4x1xf32, #tpu.memory_space<vmem>>, %arg8: memref<4x1xf32, #tpu.memory_space<vmem>>, %arg9: memref<4x56xbf16, #tpu.memory_space<vmem>>, %arg10: memref<4x1xf32, #tpu.memory_space<vmem>>, %arg11: memref<4x1xf32, #tpu.memory_space<vmem>>, %arg12: memref<4x32xf32, #tpu.memory_space<vmem>>) attributes {dimension_semantics = [#tpu.dimension_semantics<parallel>], iteration_bounds = array<i64: 1>, scalar_prefetch = 0 : i64, scratch_operands = 0 : i64, tpu.core_type = #tpu.core_type<tc>, window_params = [{transform_indices = @transform_0, window_bounds = array<i64: 4, 32>}, {transform_indices = @transform_1, window_bounds = array<i64: 4, 32>}, {transform_indices = @transform_2, window_bounds = array<i64: 4, 32>}, {pipeline_mode = #tpu.pipeline_mode<synchronous>, transform_indices = @transform_3, window_bounds = array<i64: 2, 32>}, {pipeline_mode = #tpu.pipeline_mode<synchronous>, transform_indices = @transform_4, window_bounds = array<i64: 7, 32>}, {pipeline_mode = #tpu.pipeline_mode<synchronous>, transform_indices = @transform_5, window_bounds = array<i64: 4, 56>}, {pipeline_mode = #tpu.pipeline_mode<synchronous>, transform_indices = @transform_6, window_bounds = array<i64: 4, 1>}, {pipeline_mode = #tpu.pipeline_mode<synchronous>, transform_indices = @transform_7, window_bounds = array<i64: 4, 1>}, {pipeline_mode = #tpu.pipeline_mode<synchronous>, transform_indices = @transform_8, window_bounds = array<i64: 4, 56>}, {pipeline_mode = #tpu.pipeline_mode<synchronous>, transform_indices = @transform_9, window_bounds = array<i64: 4, 1>}, {pipeline_mode = #tpu.pipeline_mode<synchronous>, transform_indices = @transform_10, window_bounds = array<i64: 4, 1>}, {transform_indices = @transform_11, window_bounds = array<i64: 4, 32>}]} {
    %c0 = arith.constant 0 : index
    %c0_0 = arith.constant 0 : index
    %0 = vector.load %arg5[%c0, %c0_0] : memref<7x32xf32, #tpu.memory_space<vmem>>, vector<7x32xf32>
    %c0_1 = arith.constant 0 : index
    %c0_2 = arith.constant 0 : index
    %1 = vector.load %arg2[%c0_1, %c0_2] : memref<4x32xbf16, #tpu.memory_space<vmem>>, vector<4x32xbf16>
    %2 = arith.extf %1 : vector<4x32xbf16> to vector<4x32xf32>
    %c0_3 = arith.constant 0 : index
    %c0_4 = arith.constant 0 : index
    %3 = vector.load %arg4[%c0_3, %c0_4] : memref<2x32xf32, #tpu.memory_space<vmem>>, vector<1x32xf32>
    %4 = vector.broadcast %3 : vector<1x32xf32> to vector<4x32xf32>
    %5 = arith.mulf %2, %4 : vector<4x32xf32>
    %c0_5 = arith.constant 0 : index
    %c0_6 = arith.constant 0 : index
    %6 = vector.load %arg3[%c0_5, %c0_6] : memref<4x32xbf16, #tpu.memory_space<vmem>>, vector<4x32xbf16>
    %7 = arith.extf %6 : vector<4x32xbf16> to vector<4x32xf32>
    %c1 = arith.constant 1 : index
    %c0_7 = arith.constant 0 : index
    %8 = vector.load %arg4[%c1, %c0_7] : memref<2x32xf32, #tpu.memory_space<vmem>>, vector<1x32xf32>
    %9 = vector.broadcast %8 : vector<1x32xf32> to vector<4x32xf32>
    %10 = arith.mulf %7, %9 : vector<4x32xf32>
    %11 = arith.addf %5, %10 : vector<4x32xf32>
    %c0_8 = arith.constant 0 : index
    %c0_9 = arith.constant 0 : index
    %12 = vector.load %arg1[%c0_8, %c0_9] : memref<4x32xbf16, #tpu.memory_space<vmem>>, vector<4x32xbf16>
    %13 = arith.extf %12 : vector<4x32xbf16> to vector<4x32xf32>
    %14 = tpu.concatenate %13, %11 in 0 : vector<4x32xf32>, vector<4x32xf32> -> vector<8x32xf32>
    %c0_10 = arith.constant 0 : index
    %c0_11 = arith.constant 0 : index
    %15 = vector.load %arg6[%c0_10, %c0_11] : memref<4x56xbf16, #tpu.memory_space<vmem>>, vector<4x56xbf16>
    %c3_i32 = arith.constant 3 : i32
    %16 = tpu.dynamic_rotate %14 by %c3_i32 dim 1 : vector<8x32xf32>, i32 -> vector<8x32xf32>
    %17 = vector.extract_strided_slice %0 {offsets = [0, 0], sizes = [1, 32], strides = [1, 1]} : vector<7x32xf32> to vector<1x32xf32>
    %18 = vector.broadcast %17 : vector<1x32xf32> to vector<8x32xf32>
    %19 = arith.mulf %16, %18 : vector<8x32xf32>
    %c2_i32 = arith.constant 2 : i32
    %20 = tpu.dynamic_rotate %14 by %c2_i32 dim 1 : vector<8x32xf32>, i32 -> vector<8x32xf32>
    %21 = vector.extract_strided_slice %0 {offsets = [1, 0], sizes = [1, 32], strides = [1, 1]} : vector<7x32xf32> to vector<1x32xf32>
    %22 = vector.broadcast %21 : vector<1x32xf32> to vector<8x32xf32>
    %23 = arith.mulf %20, %22 : vector<8x32xf32>
    %c1_i32 = arith.constant 1 : i32
    %24 = tpu.dynamic_rotate %14 by %c1_i32 dim 1 : vector<8x32xf32>, i32 -> vector<8x32xf32>
    %25 = vector.extract_strided_slice %0 {offsets = [2, 0], sizes = [1, 32], strides = [1, 1]} : vector<7x32xf32> to vector<1x32xf32>
    %26 = vector.broadcast %25 : vector<1x32xf32> to vector<8x32xf32>
    %27 = arith.mulf %24, %26 : vector<8x32xf32>
    %c31_i32 = arith.constant 31 : i32
    %28 = tpu.dynamic_rotate %14 by %c31_i32 dim 1 : vector<8x32xf32>, i32 -> vector<8x32xf32>
    %29 = vector.extract_strided_slice %0 {offsets = [4, 0], sizes = [1, 32], strides = [1, 1]} : vector<7x32xf32> to vector<1x32xf32>
    %30 = vector.broadcast %29 : vector<1x32xf32> to vector<8x32xf32>
    %31 = arith.mulf %28, %30 : vector<8x32xf32>
    %c30_i32 = arith.constant 30 : i32
    %32 = tpu.dynamic_rotate %14 by %c30_i32 dim 1 : vector<8x32xf32>, i32 -> vector<8x32xf32>
    %33 = vector.extract_strided_slice %0 {offsets = [5, 0], sizes = [1, 32], strides = [1, 1]} : vector<7x32xf32> to vector<1x32xf32>
    %34 = vector.broadcast %33 : vector<1x32xf32> to vector<8x32xf32>
    %35 = arith.mulf %32, %34 : vector<8x32xf32>
    %c29_i32 = arith.constant 29 : i32
    %36 = tpu.dynamic_rotate %14 by %c29_i32 dim 1 : vector<8x32xf32>, i32 -> vector<8x32xf32>
    %37 = vector.extract_strided_slice %0 {offsets = [6, 0], sizes = [1, 32], strides = [1, 1]} : vector<7x32xf32> to vector<1x32xf32>
    %38 = vector.broadcast %37 : vector<1x32xf32> to vector<8x32xf32>
    %39 = arith.mulf %36, %38 : vector<8x32xf32>
    %40 = tpu.concatenate %19, %23, %27, %14, %31, %35, %39 in 0 : vector<8x32xf32>, vector<8x32xf32>, vector<8x32xf32>, vector<8x32xf32>, vector<8x32xf32>, vector<8x32xf32>, vector<8x32xf32> -> vector<56x32xf32>
    %41 = arith.truncf %40 : vector<56x32xf32> to vector<56x32xbf16>
    %cst = arith.constant dense<0.000000e+00> : vector<4x32xf32>
    %42 = tpu.matmul %15, %41, %cst {dimension_numbers = #tpu.dot_dimension_numbers<[1], [0], [0], [1], [0, 0, 1, 1], [], []>} : vector<4x56xbf16>, vector<56x32xbf16>, vector<4x32xf32> -> vector<4x32xf32>
    %c0_12 = arith.constant 0 : index
    %c0_13 = arith.constant 0 : index
    %43 = vector.load %arg7[%c0_12, %c0_13] : memref<4x1xf32, #tpu.memory_space<vmem>>, vector<4x1xf32>
    %44 = vector.broadcast %43 : vector<4x1xf32> to vector<4x32xf32>
    %45 = arith.mulf %42, %44 : vector<4x32xf32>
    %c0_14 = arith.constant 0 : index
    %c0_15 = arith.constant 0 : index
    %46 = vector.load %arg8[%c0_14, %c0_15] : memref<4x1xf32, #tpu.memory_space<vmem>>, vector<4x1xf32>
    %47 = vector.broadcast %46 : vector<4x1xf32> to vector<4x32xf32>
    %48 = arith.addf %45, %47 : vector<4x32xf32>
    %cst_16 = arith.constant 0.000000e+00 : f32
    %49 = vector.broadcast %cst_16 : f32 to vector<4x32xf32>
    %50 = arith.maximumf %48, %49 : vector<4x32xf32>
    %c0_17 = arith.constant 0 : index
    %c0_18 = arith.constant 0 : index
    %51 = vector.load %arg9[%c0_17, %c0_18] : memref<4x56xbf16, #tpu.memory_space<vmem>>, vector<4x56xbf16>
    %cst_19 = arith.constant 0.000000e+00 : f32
    %52 = vector.broadcast %cst_19 : f32 to vector<4x32xf32>
    %c3_i32_20 = arith.constant 3 : i32
    %53 = tpu.dynamic_rotate %50 by %c3_i32_20 dim 1 : vector<4x32xf32>, i32 -> vector<4x32xf32>
    %54 = vector.extract_strided_slice %0 {offsets = [0, 0], sizes = [1, 32], strides = [1, 1]} : vector<7x32xf32> to vector<1x32xf32>
    %55 = vector.broadcast %54 : vector<1x32xf32> to vector<4x32xf32>
    %56 = arith.mulf %53, %55 : vector<4x32xf32>
    %c2_i32_21 = arith.constant 2 : i32
    %57 = tpu.dynamic_rotate %50 by %c2_i32_21 dim 1 : vector<4x32xf32>, i32 -> vector<4x32xf32>
    %58 = vector.extract_strided_slice %0 {offsets = [1, 0], sizes = [1, 32], strides = [1, 1]} : vector<7x32xf32> to vector<1x32xf32>
    %59 = vector.broadcast %58 : vector<1x32xf32> to vector<4x32xf32>
    %60 = arith.mulf %57, %59 : vector<4x32xf32>
    %c1_i32_22 = arith.constant 1 : i32
    %61 = tpu.dynamic_rotate %50 by %c1_i32_22 dim 1 : vector<4x32xf32>, i32 -> vector<4x32xf32>
    %62 = vector.extract_strided_slice %0 {offsets = [2, 0], sizes = [1, 32], strides = [1, 1]} : vector<7x32xf32> to vector<1x32xf32>
    %63 = vector.broadcast %62 : vector<1x32xf32> to vector<4x32xf32>
    %64 = arith.mulf %61, %63 : vector<4x32xf32>
    %c31_i32_23 = arith.constant 31 : i32
    %65 = tpu.dynamic_rotate %50 by %c31_i32_23 dim 1 : vector<4x32xf32>, i32 -> vector<4x32xf32>
    %66 = vector.extract_strided_slice %0 {offsets = [4, 0], sizes = [1, 32], strides = [1, 1]} : vector<7x32xf32> to vector<1x32xf32>
    %67 = vector.broadcast %66 : vector<1x32xf32> to vector<4x32xf32>
    %68 = arith.mulf %65, %67 : vector<4x32xf32>
    %c30_i32_24 = arith.constant 30 : i32
    %69 = tpu.dynamic_rotate %50 by %c30_i32_24 dim 1 : vector<4x32xf32>, i32 -> vector<4x32xf32>
    %70 = vector.extract_strided_slice %0 {offsets = [5, 0], sizes = [1, 32], strides = [1, 1]} : vector<7x32xf32> to vector<1x32xf32>
    %71 = vector.broadcast %70 : vector<1x32xf32> to vector<4x32xf32>
    %72 = arith.mulf %69, %71 : vector<4x32xf32>
    %c29_i32_25 = arith.constant 29 : i32
    %73 = tpu.dynamic_rotate %50 by %c29_i32_25 dim 1 : vector<4x32xf32>, i32 -> vector<4x32xf32>
    %74 = vector.extract_strided_slice %0 {offsets = [6, 0], sizes = [1, 32], strides = [1, 1]} : vector<7x32xf32> to vector<1x32xf32>
    %75 = vector.broadcast %74 : vector<1x32xf32> to vector<4x32xf32>
    %76 = arith.mulf %73, %75 : vector<4x32xf32>
    %77 = tpu.concatenate %56, %52, %60, %52, %64, %52, %50, %52, %68, %52, %72, %52, %76, %52 in 0 : vector<4x32xf32>, vector<4x32xf32>, vector<4x32xf32>, vector<4x32xf32>, vector<4x32xf32>, vector<4x32xf32>, vector<4x32xf32>, vector<4x32xf32>, vector<4x32xf32>, vector<4x32xf32>, vector<4x32xf32>, vector<4x32xf32>, vector<4x32xf32>, vector<4x32xf32> -> vector<56x32xf32>
    %78 = arith.truncf %77 : vector<56x32xf32> to vector<56x32xbf16>
    %cst_26 = arith.constant dense<0.000000e+00> : vector<4x32xf32>
    %79 = tpu.matmul %51, %78, %cst_26 {dimension_numbers = #tpu.dot_dimension_numbers<[1], [0], [0], [1], [0, 0, 1, 1], [], []>} : vector<4x56xbf16>, vector<56x32xbf16>, vector<4x32xf32> -> vector<4x32xf32>
    %c0_27 = arith.constant 0 : index
    %c0_28 = arith.constant 0 : index
    %80 = vector.load %arg10[%c0_27, %c0_28] : memref<4x1xf32, #tpu.memory_space<vmem>>, vector<4x1xf32>
    %81 = vector.broadcast %80 : vector<4x1xf32> to vector<4x32xf32>
    %82 = arith.mulf %79, %81 : vector<4x32xf32>
    %c0_29 = arith.constant 0 : index
    %c0_30 = arith.constant 0 : index
    %83 = vector.load %arg11[%c0_29, %c0_30] : memref<4x1xf32, #tpu.memory_space<vmem>>, vector<4x1xf32>
    %84 = vector.broadcast %83 : vector<4x1xf32> to vector<4x32xf32>
    %85 = arith.addf %82, %84 : vector<4x32xf32>
    %cst_31 = arith.constant 0.000000e+00 : f32
    %86 = vector.broadcast %cst_31 : f32 to vector<4x32xf32>
    %87 = arith.maximumf %85, %86 : vector<4x32xf32>
    %c0_32 = arith.constant 0 : index
    %c0_33 = arith.constant 0 : index
    %88 = vector.load %arg12[%c0_32, %c0_33] : memref<4x32xf32, #tpu.memory_space<vmem>>, vector<4x32xf32>
    tpu.vector_store %arg12[%c0_32, %c0_33], %87 {strides = array<i32>} : memref<4x32xf32, #tpu.memory_space<vmem>>, vector<4x32xf32>,
    return
  }
  func.func @transform_0(%arg0: i32) -> (i32, i32) {
    %c0_i32 = arith.constant 0 : i32
    %c0_i32_0 = arith.constant 0 : i32
    return %c0_i32, %arg0 : i32, i32
  }
  func.func @transform_1(%arg0: i32) -> (i32, i32) {
    %c0_i32 = arith.constant 0 : i32
    %c0_i32_0 = arith.constant 0 : i32
    return %c0_i32, %arg0 : i32, i32
  }
  func.func @transform_2(%arg0: i32) -> (i32, i32) {
    %c0_i32 = arith.constant 0 : i32
    %c0_i32_0 = arith.constant 0 : i32
    return %c0_i32, %arg0 : i32, i32
  }
  func.func @transform_3(%arg0: i32) -> (i32, i32) {
    %c0_i32 = arith.constant 0 : i32
    %c0_i32_0 = arith.constant 0 : i32
    %c0_i32_1 = arith.constant 0 : i32
    return %c0_i32, %c0_i32_0 : i32, i32
  }
  func.func @transform_4(%arg0: i32) -> (i32, i32) {
    %c0_i32 = arith.constant 0 : i32
    %c0_i32_0 = arith.constant 0 : i32
    %c0_i32_1 = arith.constant 0 : i32
    return %c0_i32, %c0_i32_0 : i32, i32
  }
  func.func @transform_5(%arg0: i32) -> (i32, i32) {
    %c0_i32 = arith.constant 0 : i32
    %c0_i32_0 = arith.constant 0 : i32
    %c0_i32_1 = arith.constant 0 : i32
    return %c0_i32, %c0_i32_0 : i32, i32
  }
  func.func @transform_6(%arg0: i32) -> (i32, i32) {
    %c0_i32 = arith.constant 0 : i32
    %c0_i32_0 = arith.constant 0 : i32
    %c0_i32_1 = arith.constant 0 : i32
    return %c0_i32, %c0_i32_0 : i32, i32
  }
  func.func @transform_7(%arg0: i32) -> (i32, i32) {
    %c0_i32 = arith.constant 0 : i32
    %c0_i32_0 = arith.constant 0 : i32
    %c0_i32_1 = arith.constant 0 : i32
    return %c0_i32, %c0_i32_0 : i32, i32
  }
  func.func @transform_8(%arg0: i32) -> (i32, i32) {
    %c0_i32 = arith.constant 0 : i32
    %c0_i32_0 = arith.constant 0 : i32
    %c0_i32_1 = arith.constant 0 : i32
    return %c0_i32, %c0_i32_0 : i32, i32
  }
  func.func @transform_9(%arg0: i32) -> (i32, i32) {
    %c0_i32 = arith.constant 0 : i32
    %c0_i32_0 = arith.constant 0 : i32
    %c0_i32_1 = arith.constant 0 : i32
    return %c0_i32, %c0_i32_0 : i32, i32
  }
  func.func @transform_10(%arg0: i32) -> (i32, i32) {
    %c0_i32 = arith.constant 0 : i32
    %c0_i32_0 = arith.constant 0 : i32
    %c0_i32_1 = arith.constant 0 : i32
    return %c0_i32, %c0_i32_0 : i32, i32
  }
  func.func @transform_11(%arg0: i32) -> (i32, i32) {
    %c0_i32 = arith.constant 0 : i32
    %c0_i32_0 = arith.constant 0 : i32
    return %c0_i32, %arg0 : i32, i32
  }
}

</mosaic_0001>

<bundles_post_ra>
// kernel: tpu_custom_call.1
= control target key start
LH: loop header
LB: loop body
LE: loop exit
PB: predicated region body
PF: predicated region fallthrough
CT: control target
= control target key end

     0   :  { %s516_s0 = inlined_call_operand.vmem [shape: bf16[4,32], index: 0, kind: input, shape index: {}]   ;;  %s517_s1 = inlined_call_operand.vmem [shape: bf16[4,32], index: 1, kind: input, shape index: {}]   ;;  %s518_s2 = inlined_call_operand.vmem [shape: bf16[4,32], index: 2, kind: input, shape index: {}]   ;;  %s519_s3 = inlined_call_operand.vmem [shape: f32[2,32], index: 3, kind: input, shape index: {}]   ;;  %s520_s4 = inlined_call_operand.vmem [shape: f32[7,32], index: 4, kind: input, shape index: {}]   ;;  %s521_s5 = inlined_call_operand.vmem [shape: bf16[4,56], index: 5, kind: input, shape index: {}]   ;;  %s522_s6 = inlined_call_operand.vmem [shape: f32[4,1], index: 6, kind: input, shape index: {}]   ;;  %s523_s7 = inlined_call_operand.vmem [shape: f32[4,1], index: 7, kind: input, shape index: {}]   ;;  %s524_s8 = inlined_call_operand.vmem [shape: bf16[4,56], index: 8, kind: input, shape index: {}]   ;;  %s525_s9 = inlined_call_operand.vmem [shape: f32[4,1], index: 9, kind: input, shape index: {}]   ;;  %s526_s10 = inlined_call_operand.vmem [shape: f32[4,1], index: 10, kind: input, shape index: {}]   ;;  %s527_s11 = inlined_call_operand.hbm [shape: f32[4,32], index: 11, kind: output, shape index: {}]  }
   0x1   :  { %v41_v0 = vld [vmem:[%s517_s1] sm:$0x3] }
   0x2   :  { %v317_v1 = vld [vmem:[%s519_s3] ss:$0 sm:$0xff]  ;;  %v42_v2 = vunpack.c.l.bf16 %v41_v0  ;;  %v318_v4 = vld [vmem:[%s519_s3 + $0x1] ss:$0 sm:$0xff] }
   0x3   :  { %v46_v3 = vld [vmem:[%s518_s2] sm:$0x3] }
   0x4   :  { %v47_v5 = vunpack.c.l.bf16 %v46_v3  ;;  %v40_v6 = vld [vmem:[%s520_s4] sm:$0x7f]  ;;  %v45_v7 = vmul.f32 %v317_v1, %v42_v2 }
   0x5   :  { %v99_v8 = vperm.slane %v40_v6, 6 }
   0x6   :  { %16 = vsyncpa [#allocation3], 0  ;;  %v50_v9 = vmul.f32 %v318_v4, %v47_v5  ;;  %s345_s1 = smov 3   ;;  %v52_v11 = vld [vmem:[%s516_s0] sm:$0x3]  ;;  %vm59_vm0 = vcmask 1043456  }
   0x7   :  { %101 = vrot.lane.b32.xlu1 %v99_v8, %s345_s1  ;;  %v53_v12 = vunpack.c.l.bf16 %v52_v11  ;;  %s346_s2 = smov 32   ;;  %v87_v15 = vperm.slane %v40_v6, 4  ;;  %s347_s3 = smov 1   ;;  %v93_v16 = vperm.slane %v40_v6, 5  ;;  %v81_v17 = vperm.slane %v40_v6, 2 }
   0x8   :  { %v51_v10 = vadd.f32 %v50_v9, %v45_v7  ;;  %s348_s4 = smov 2   ;;  %s349_s29 = smov 31   ;;  %vm62_vm1 = vcmask 1047808   ;;  %v75_v20 = vperm.slane %v40_v6, 1  ;;  %v69_v30 = vperm.slane %v40_v6, 0 }
   0x9   :  { %95 = vrot.lane.b32.xlu2 %v93_v16, %s348_s4  ;;  %s350_s0 = smov 30   ;;  %s351_s30 = smov 26   ;;  %v168_v48 = vld [vmem:[%s522_s6] sm:$0xf]  ;;  %v358_v50 = vmov 0   ;;  %vm148_vm2 = vcmask 457728  }
   0xa   :  { %56 = vst [vmem:[#allocation1 + $0x1] ss:$2 sm:$0xff] %v51_v10  ;;  %s352_s12 = smov 28   ;;  %s353_s13 = smov 27   ;;  %v175_v49 = vld [vmem:[%s523_s7] sm:$0xf]  ;;  %315 = vset.pattern.permute.xlu0 %v358_v50  ;;  %316 = vset.pattern.permute.xlu1 %v358_v50 }
   0xb   :  { %s354_s14 = smov 126   ;;  %s355_s15 = smov 29   ;;  %v61_v54 = vld [vmem:[%s521_s5] sm:$0x3]  ;;  %vm280_vm3 = vcmask 257024  }
   0xc   :  { %s356_s16 = smov 127   ;;  %s357_s17 = smov 99  }
   0xd   :  { %s289_s28 = sshll.u32 %s527_s11, 4  ;;  %s290_s28 = int_to_ptr.hbm [resolvable:$true] %s289_s28 }
   0xf   :  { %89 = vrot.lane.b32.xlu1 %v87_v15, %s347_s3 }
  0x11   :  { %v57_v13 = vld.sshfl [vmem:[#allocation1] sm:$0xff pattern:$0x75316420]  ;;  %83 = vrot.lane.b32.xlu2 %v81_v17, %s349_s29 }
  0x12   :  { %v60_v14 = vsel %vm59_vm0, %v53_v12, %v57_v13 }
  0x13   :  { %63 = vrot.lane.b32.xlu0 %v60_v14, %s346_s2 }
  0x63   :  { %v444_v22 = vpop.permute.xlu2 %95 }
  0x6b   :  { %v455_v29 = vpop.permute.xlu2 %83 }
  0x79   :  { %v442_v21 = vpop.permute.xlu1 %101 }
  0x81   :  { %v446_v23 = vpop.permute.xlu1 %89 }
  0x85   :  { %v64_v18 = vpop.permute.xlu0 %63 }
  0x86   :  { %v65_v19 = vsel %vm62_vm1, %v64_v18, %v60_v14 }
  0x87   :  { %66 = vrot.lane.b32.xlu0 %v65_v19, %s346_s2 }
  0x8f   :  { %77 = vrot.lane.b32.xlu0 %v75_v20, %s350_s0 }
  0xf9   :  { %v67_v24 = vpop.permute.xlu0 %66 }
  0xfa   :  { %v68_v25 = vsel %vm62_vm1, %v67_v24, %v60_v14  ;;  %v265_v24 = vld [vmem:[%s525_s9] sm:$0xf] }
  0xfb   :  { %v92_v26 = vmul.f32 %v446_v23, %v68_v25  ;;  %v104_v27 = vmul.f32 %v442_v21, %v68_v25  ;;  %v98_v28 = vmul.f32 %v444_v22, %v68_v25  ;;  %v86_v31 = vmul.f32 %v455_v29, %v68_v25 }
  0xfd   :  { %126 = vrot.lane.b32.xlu1 %v104_v27, %s351_s30  ;;  %118 = vrot.lane.b32.xlu2 %v92_v26, %s352_s12  ;;  %v272_v26 = vld [vmem:[%s526_s10] sm:$0xf]  ;;  %s359_s10 = smov [#allocation2]  }
  0xfe   :  { %122 = vrot.lane.b32.xlu0 %v98_v28, %s353_s13  ;;  %s287_s26 = sshll.u32 %s359_s10, 4  ;;  %s288_s26 = int_to_ptr.vmem [resolvable:$true] %s287_s26 }
 0x101   :  { %v78_v32 = vpop.permute.xlu0 %77 }
 0x102   :  { %v80_v33 = vmul.f32 %v78_v32, %v68_v25 }
 0x105   :  { %110 = vrot.lane.b32.xlu1 %v86_v31, %s354_s14  ;;  %114 = vrot.lane.b32.xlu2 %v60_v14, %s355_s15 }
 0x106   :  { %71 = vrot.lane.b32.xlu0 %v69_v30, %s355_s15 }
 0x10d   :  { %106 = vrot.lane.b32.xlu1 %v80_v33, %s356_s16 }
 0x157   :  { %v119_v34 = vpop.permute.xlu2 %118 }
 0x15f   :  { %v115_v39 = vpop.permute.xlu2 %114 }
 0x16f   :  { %v127_v35 = vpop.permute.xlu1 %126 }
 0x170   :  { %v132_v36 = vpack.c.bf16 %v127_v35, %v127_v35  ;;  %v123_v37 = vpop.permute.xlu0 %122 }
 0x171   :  { %v131_v38 = vpack.c.bf16 %v123_v37, %v119_v34 }
 0x172   :  { %143 = vrot.lane.b32.xlu2 %v132_v36, %s357_s17 }
 0x173   :  { %141 = vrot.lane.b32.xlu0 %v131_v38, %s357_s17 }
 0x177   :  { %v111_v40 = vpop.permute.xlu1 %110 }
 0x178   :  { %v130_v41 = vpack.c.bf16 %v115_v39, %v111_v40  ;;  %v72_v42 = vpop.permute.xlu0 %71 }
 0x179   :  { %v74_v43 = vmul.f32 %v72_v42, %v68_v25 }
 0x17a   :  { %139 = vrot.lane.b32.xlu1 %v130_v41, %s357_s17 }
 0x17b   :  { %171 = vperm.xlu0 %315, %v168_v48  }
 0x17f   :  { %v107_v44 = vpop.permute.xlu1 %106 }
 0x180   :  { %v129_v45 = vpack.c.bf16 %v107_v44, %v74_v43 }
 0x182   :  { %137 = vrot.lane.b32.xlu2 %v129_v45, %s357_s17  ;;  %178 = vperm.xlu1 %316, %v175_v49  }
 0x1cc   :  { %v144_v46 = vpop.permute.xlu2 %143 }
 0x1cd   :  { %v153_v47 = vsel %vm59_vm0, %v144_v46, 0 }
 0x1ce   :  { %159 = vmatpush.bf16.msra.mxu0 %v153_v47 }
 0x1dc   :  { %v138_v53 = vpop.permute.xlu2 %137 }
 0x1e5   :  { %v142_v51 = vpop.permute.xlu0 %141 }
 0x1e6   :  { %160 = vmatpush.bf16.msra.mxu0 %v142_v51 }
 0x1ec   :  { %v140_v52 = vpop.permute.xlu1 %139 }
 0x1ed   :  { %161 = vmatpush.bf16.msra.mxu0 %v140_v52  ;;  %v172_v55 = vpop.permute.xlu0 %171 }
 0x1f1   :  { %162 = vmatpush.bf16.msra.mxu0 %v138_v53 }
 0x1f4   :  { %298 = vmatmul.msk.bf16.vlgmr.msra.gmra.mxu0 %vm148_vm2, %v61_v54  ;;  %v179_v57 = vpop.permute.xlu1 %178 }
 0x271   :  { %v164_v56 = vpop.f32.mrf.mxu0 }
 0x272   :  { %v174_v58 = vmul.f32 %v172_v55, %v164_v56 }
 0x274   :  { %v181_v59 = vadd.f32 %v179_v57, %v174_v58 }
 0x276   :  { %v182_v60 = vmax.f32 %v181_v59, 0.0 }
 0x278   :  { %184 = vrot.lane.b32.xlu2 %v182_v60, %s346_s2 }
 0x279   :  { %v166_v61 = vpop.f32.mrf.mxu0 }
 0x2d2   :  { %v185_v62 = vpop.permute.xlu2 %184 }
 0x2d3   :  { %v186_v63 = vsel %vm62_vm1, %v185_v62, %v182_v60 }
 0x2d4   :  { %187 = vrot.lane.b32.xlu1 %v186_v63, %s346_s2 }
 0x346   :  { %v188_v0 = vpop.permute.xlu1 %187 }
 0x347   :  { %v189_v1 = vsel %vm62_vm1, %v188_v0, %v182_v60 }
 0x348   :  { %v195_v2 = vmul.f32 %v189_v1, %v442_v21  ;;  %v194_v3 = vmul.f32 %v189_v1, %v444_v22  ;;  %v193_v4 = vmul.f32 %v189_v1, %v446_v23  ;;  %v192_v5 = vmul.f32 %v189_v1, %v455_v29 }
 0x349   :  { %v191_v6 = vmul.f32 %v189_v1, %v78_v32  ;;  %v190_v15 = vmul.f32 %v189_v1, %v72_v42  ;;  %v183_v32 = vld [vmem:[%s524_s8] sm:$0x3] }
 0x34a   :  { %217 = vrot.lane.b32.xlu2 %v195_v2, %s351_s30  ;;  %213 = vrot.lane.b32.xlu1 %v194_v3, %s353_s13 }
 0x34b   :  { %209 = vrot.lane.b32.xlu0 %v193_v4, %s352_s12  ;;  %v220_v19 = vsel %vm59_vm0, %v190_v15, 0.0 }
 0x352   :  { %201 = vrot.lane.b32.xlu2 %v192_v5, %s354_s14  ;;  %197 = vrot.lane.b32.xlu1 %v191_v6, %s356_s16 }
 0x353   :  { %205 = vrot.lane.b32.xlu0 %v182_v60, %s355_s15 }
 0x3a4   :  { %v218_v7 = vpop.permute.xlu2 %217 }
 0x3a5   :  { %v226_v8 = vsel %vm59_vm0, %v218_v7, 0.0 }
 0x3a6   :  { %v230_v9 = vpack.c.bf16 %v226_v8, %v226_v8 }
 0x3a8   :  { %241 = vrot.lane.b32.xlu2 %v230_v9, %s357_s17 }
 0x3ac   :  { %v202_v16 = vpop.permute.xlu2 %201 }
 0x3ad   :  { %v222_v21 = vsel %vm59_vm0, %v202_v16, 0.0 }
 0x3bc   :  { %v214_v10 = vpop.permute.xlu1 %213 }
 0x3bd   :  { %v225_v11 = vsel %vm59_vm0, %v214_v10, 0.0  ;;  %v210_v12 = vpop.permute.xlu0 %209 }
 0x3be   :  { %v224_v13 = vsel %vm59_vm0, %v210_v12, 0.0 }
 0x3bf   :  { %v229_v14 = vpack.c.bf16 %v225_v11, %v224_v13 }
 0x3c1   :  { %239 = vrot.lane.b32.xlu0 %v229_v14, %s357_s17 }
 0x3c4   :  { %v198_v17 = vpop.permute.xlu1 %197 }
 0x3c5   :  { %v206_v18 = vpop.permute.xlu0 %205  ;;  %v221_v20 = vsel %vm59_vm0, %v198_v17, 0.0 }
 0x3c6   :  { %v223_v22 = vsel %vm59_vm0, %v206_v18, 0.0  ;;  %v227_v23 = vpack.c.bf16 %v221_v20, %v220_v19 }
 0x3c7   :  { %v228_v25 = vpack.c.bf16 %v223_v22, %v222_v21 }
 0x3c8   :  { %235 = vrot.lane.b32.xlu2 %v227_v23, %s357_s17 }
 0x3c9   :  { %268 = vperm.xlu0 %315, %v265_v24   ;;  %237 = vrot.lane.b32.xlu1 %v228_v25, %s357_s17 }
 0x3d1   :  { %275 = vperm.xlu1 %316, %v272_v26  }
 0x402   :  { %v242_v27 = vpop.permute.xlu2 %241 }
 0x403   :  { %v250_v28 = vsel %vm59_vm0, %v242_v27, 0 }
 0x404   :  { %256 = vmatpush.bf16.msra.mxu1 %v250_v28 }
 0x422   :  { %v236_v31 = vpop.permute.xlu2 %235 }
 0x433   :  { %v240_v29 = vpop.permute.xlu0 %239 }
 0x434   :  { %257 = vmatpush.bf16.msra.mxu1 %v240_v29 }
 0x43b   :  { %v238_v30 = vpop.permute.xlu1 %237  ;;  %v269_v33 = vpop.permute.xlu0 %268 }
 0x43c   :  { %258 = vmatpush.bf16.msra.mxu1 %v238_v30 }
 0x440   :  { %259 = vmatpush.bf16.msra.mxu1 %v236_v31 }
 0x443   :  { %299 = vmatmul.msk.bf16.vlgmr.msra.gmra.mxu1 %vm148_vm2, %v183_v32  ;;  %v276_v36 = vpop.permute.xlu1 %275 }
 0x4c0   :  { %v261_v34 = vpop.f32.mrf.mxu1 }
 0x4c1   :  { %v271_v35 = vmul.f32 %v269_v33, %v261_v34 }
 0x4c3   :  { %v278_v37 = vadd.f32 %v276_v36, %v271_v35 }
 0x4c5   :  { %v279_v38 = vmax.f32 %v278_v37, 0.0 }
 0x4c7   :  { %281 = vst.msk [vmem:[#allocation2] sm:$0xf] %vm280_vm3, %v279_v38 }
 0x4c8   :  { %v263_v39 = vpop.f32.mrf.mxu1  ;;  %292 = dma.vmem_to_hbm [thread:$0]  %s288_s26, 64, %s290_s28, [#allocation3]  }
 0x4c9   :  { %343 = dma.done.wait [#allocation3], 64  }
 0x4ca   :  { %344 = vsyncadd [#allocation3], 4294967232 }
 0x4cb   :  { %297 = vsyncpa [#allocation3], 1 }

</bundles_post_ra>
